<compile_context>
chip_gen: v7x
topology: tpu7x:2x2x1
jax: 0.10.0
libtpu: 0.0.40
codegen_flags: <defaults>
</compile_context>

<pallas_src>
import functools
import math

import jax
import jax.numpy as jnp
from jax.experimental import pallas as pl
from jax.experimental.pallas import tpu as pltpu


# --------------------------------------------------------------------------
# Kernel body: apply the captured lambda to the whole VMEM tile.
# --------------------------------------------------------------------------
def _lambda_kernel(x_ref, o_ref, *, lambd):
    o_ref[...] = lambd(x_ref[...]).astype(o_ref.dtype)


# --------------------------------------------------------------------------
# Small helpers.
# --------------------------------------------------------------------------
def _sublane_pack(dtype) -> int:
    """Rows per packed vreg sublane group: 8 (32-bit), 16 (16-bit), 32 (8-bit)."""
    itemsize = jnp.dtype(dtype).itemsize
    return 8 * max(1, 4 // max(1, itemsize))


def _round_up(n: int, m: int) -> int:
    return -(-n // m) * m


def _cdiv(a: int, b: int) -> int:
    return -(-a // b)


@functools.lru_cache(maxsize=1)
def _chip_config():
    """Generation-aware block-size / VMEM-limit / megacore defaults."""
    kind = ""
    try:
        kind = jax.devices()[0].device_kind.lower()
    except Exception:
        pass
    if "v7" in kind:
        # 2 TensorCores, 64 MiB VMEM/TC, ~3.2 TB/s HBM: bigger blocks to
        # amortize ~0.35us/step, even grid for megacore, <=48 MiB VMEM limit.
        return {"block_bytes": 8 << 20, "vmem_ceiling": 48 << 20, "megacore": True}
    # v5e / v6e: single TensorCore.  4 MiB/buffer blocks are already <4% step
    # overhead at 0.8-1.4 TB/s; explicit >=32 MiB limit beats the 16/32 MiB
    # scoped defaults.
    return {"block_bytes": 4 << 20, "vmem_ceiling": 64 << 20, "megacore": False}


# --------------------------------------------------------------------------
# Elementwise-ness detection (correctness gate for the Pallas path).
# Shape-preserving but NON-elementwise lambdas (softmax, t - t.mean(), ...)
# must NOT be evaluated per-tile on the flattened slab.
# --------------------------------------------------------------------------
_ELEMENTWISE_PRIMS = frozenset({
    "add", "sub", "mul", "div", "rem", "max", "min", "pow", "integer_pow",
    "exp", "exp2", "log", "log1p", "expm1", "tanh", "logistic", "erf", "erfc",
    "erf_inv", "sqrt", "rsqrt", "cbrt", "abs", "neg", "sign", "floor", "ceil",
    "round", "is_finite", "sin", "cos", "tan", "asin", "acos", "atan", "atan2",
    "sinh", "cosh", "asinh", "acosh", "atanh", "select_n", "clamp",
    "nextafter", "lt", "le", "gt", "ge", "eq", "ne", "and", "or", "xor", "not",
    "shift_left", "shift_right_logical", "shift_right_arithmetic",
    "convert_element_type", "square", "copy", "real", "imag",
})
_CALL_PRIMS = frozenset({
    "pjit", "jit", "closed_call", "core_call", "custom_jvp_call",
    "custom_vjp_call", "custom_jvp_call_jaxpr", "custom_vjp_call_jaxpr",
    "remat", "remat2", "checkpoint",
})


def _jaxpr_is_elementwise(j) -> bool:
    j = getattr(j, "jaxpr", j)
    for eqn in j.eqns:
        name = eqn.primitive.name
        if name in _ELEMENTWISE_PRIMS:
            continue
        if name == "broadcast_in_dim":
            # Only broadcasts of scalar / size-1 constants are elementwise-safe.
            shp = getattr(eqn.invars[0].aval, "shape", ())
            if all(int(d) == 1 for d in shp):
                continue
            return False
        if name in _CALL_PRIMS:
            subs = [v for v in eqn.params.values()
                    if hasattr(v, "eqns") or hasattr(v, "jaxpr")]
            if subs and all(_jaxpr_is_elementwise(s) for s in subs):
                continue
            return False
        return False
    return True


def _is_elementwise(lambd, x) -> bool:
    try:
        closed = jax.make_jaxpr(lambd)(x)
    except Exception:
        return False
    # Captured non-scalar constants (e.g. a weight of x's shape) would not
    # re-layout with the flattened slab -> refuse the kernel path.
    for c in getattr(closed, "consts", ()):
        shp = jnp.shape(c)
        if math.prod(shp) > 1 or len(shp) > 2:
            return False
    return _jaxpr_is_elementwise(closed.jaxpr)


# --------------------------------------------------------------------------
# LambdaLayer forward factory.
# --------------------------------------------------------------------------
def lambda_layer(
    lambd,
    *,
    lanes: int | None = None,           # force a lane width (multiple of 128)
    target_block_bytes: int | None = None,  # per-buffer block budget override
    min_bytes_for_kernel: int = 1 << 20,
    in_place: bool = False,             # alias in/out (caller donates x)
):
    """Returns a callable equivalent to LambdaLayer(lambd).forward."""
    if lanes is not None:
        assert lanes % 128 == 0, "lanes must be a multiple of 128"

    def forward(x):
        x = jnp.asarray(x)
        out_struct = jax.eval_shape(lambd, x)

        # Shape-changing lambdas: plain JAX == exact module semantics.
        if out_struct.shape != x.shape or x.size == 0:
            return lambd(x)

        out_dtype = out_struct.dtype
        in_item = jnp.dtype(x.dtype).itemsize
        out_item = jnp.dtype(out_dtype).itemsize

        # Tiny inputs: launch + per-step overhead dwarfs the work.
        if x.size * max(in_item, out_item) < min_bytes_for_kernel:
            return lambd(x)

        # Shape-preserving but non-elementwise lambdas must not run per-tile.
        # TODO(synk): such lambdas (softmax, centering, ...) run as plain JAX,
        # identical semantics to LambdaLayer.forward, just no custom kernel.
        if not _is_elementwise(lambd, x):
            return lambd(x)

        cfg = _chip_config()
        block_budget = int(target_block_bytes or cfg["block_bytes"])

        total = x.size
        # Lane width: largest candidate dividing total -> view-only reshape,
        # zero pad / slice passes.  Otherwise a 1024-lane slab with a tiny
        # edge-padded tail (< lanes elements).
        if lanes is not None:
            lane_w = lanes
            padded = (total % lane_w != 0)
        else:
            lane_w, padded = 1024, True
            for cand in (4096, 2048, 1024, 512, 256, 128):
                if total % cand == 0:
                    lane_w, padded = cand, False
                    break

        rows = _cdiv(total, lane_w)
        row_pack = max(_sublane_pack(x.dtype), _sublane_pack(out_dtype))
        max_item = max(in_item, out_item)
        desired_rows = max(
            row_pack,
            (block_budget // (lane_w * max_item)) // row_pack * row_pack,
        )

        if cfg["megacore"]:
            # Keep both v7x TensorCores busy with a balanced, even grid.
            if desired_rows >= rows:
                if rows > row_pack:
                    tile_rows = _round_up(_cdiv(rows, 2), row_pack)
                else:
                    tile_rows = rows           # single full-dim block
            else:
                nsteps = _cdiv(rows, desired_rows)
                nsteps += nsteps % 2           # even step count
                tile_rows = _round_up(_cdiv(rows, nsteps), row_pack)
        else:
            # Single-TC chips (v5e/v6e): no forced split; one block if it fits.
            tile_rows = rows if desired_rows >= rows else desired_rows

        grid_n = _cdiv(rows, tile_rows)        # partial last block is masked

        flat = jnp.ravel(x)
        if padded:
            pad_amt = rows * lane_w - total
            if pad_amt:
                # Edge padding keeps lambd(pad) finite (no inf/nan from 1/x, log).
                flat = jnp.pad(flat, (0, pad_amt), mode="edge")
        x2d = flat.reshape(rows, lane_w)

        # VMEM budget: in + out, double-buffered, plus headroom; explicit
        # override needed on v5e (16 MiB scoped default), capped on v7x.
        block_bytes = tile_rows * lane_w * (in_item + out_item)
        vmem_limit = min(cfg["vmem_ceiling"],
                         max(32 << 20, 2 * block_bytes + (8 << 20)))

        try:
            cost = pl.estimate_cost(lambd, jax.ShapeDtypeStruct(x.shape, x.dtype))
        except Exception:
            cost = pl.CostEstimate(
                flops=int(total), transcendentals=0,
                bytes_accessed=int(total * (in_item + out_item)))

        aliases = {}
        if in_place and (not padded) and out_dtype == x.dtype:
            aliases = {0: 0}

        out2d = pl.pallas_call(
            functools.partial(_lambda_kernel, lambd=lambd),
            out_shape=jax.ShapeDtypeStruct((rows, lane_w), out_dtype),
            grid=(grid_n,),
            in_specs=[pl.BlockSpec((tile_rows, lane_w), lambda i: (i, 0))],
            out_specs=pl.BlockSpec((tile_rows, lane_w), lambda i: (i, 0)),
            compiler_params=pltpu.CompilerParams(
                dimension_semantics=("parallel",),
                vmem_limit_bytes=int(vmem_limit),
            ),
            cost_estimate=cost,
            input_output_aliases=aliases,
        )(x2d)

        if padded:
            return jnp.ravel(out2d)[:total].reshape(x.shape)
        return out2d.reshape(x.shape)

    return forward


if __name__ == "__main__":
    key = jax.random.PRNGKey(0)
    k1, k2, k3 = jax.random.split(key, 3)

    # Case 1: NCHW input consistent with the module (batch=2, channels=4,
    # spatial 16x16); elementwise lambda; single lane-dense block, no padding.
    x = jax.random.normal(k1, (2, 4, 16, 16), dtype=jnp.float32)
    lambd = lambda t: jax.nn.relu(t) * 1.5 + 0.25
    layer = lambda_layer(lambd, min_bytes_for_kernel=0)
    y = layer(x)
    jax.block_until_ready(y)
    y_ref = lambd(x)
    assert y.shape == x.shape and y.dtype == y_ref.dtype
    assert jnp.allclose(y, y_ref, atol=1e-6, rtol=1e-6)

    # Case 2: size divisible by 128 -> view-only reshape; tiny block budget
    # forces a multi-step grid with a masked partial last block.
    x1 = jax.random.normal(k2, (2, 4, 80, 96), dtype=jnp.float32)
    layer1 = lambda_layer(lambda t: jnp.exp(-jnp.abs(t)),
                          min_bytes_for_kernel=0, target_block_bytes=64 * 1024)
    y1 = layer1(x1)
    jax.block_until_ready(y1)
    assert jnp.allclose(y1, jnp.exp(-jnp.abs(x1)), atol=1e-6, rtol=1e-6)

    # Case 3: odd-sized bf16 input -> small edge-padded tail path.
    x2 = jax.random.normal(k3, (3, 5, 33, 17), dtype=jnp.bfloat16)
    layer2 = lambda_layer(lambda t: t * 2.0, min_bytes_for_kernel=0)
    y2 = layer2(x2)
    jax.block_until_ready(y2)
    assert y2.shape == x2.shape and y2.dtype == x2.dtype
    assert jnp.allclose(y2.astype(jnp.float32), (x2 * 2.0).astype(jnp.float32),
                        atol=1e-2, rtol=1e-2)

    # Case 4: shape-changing lambda -> plain-JAX fallback (exact semantics).
    layer3 = lambda_layer(lambda t: t.sum(axis=-1), min_bytes_for_kernel=0)
    y3 = layer3(x)
    jax.block_until_ready(y3)
    assert jnp.allclose(y3, x.sum(axis=-1), atol=1e-6, rtol=1e-6)

    # Case 5: shape-preserving but NON-elementwise lambda -> detected via
    # jaxpr inspection and computed as plain JAX (was a silent-wrongness risk).
    layer4 = lambda_layer(lambda t: jax.nn.softmax(t, axis=-1),
                          min_bytes_for_kernel=0)
    y4 = layer4(x)
    jax.block_until_ready(y4)
    assert jnp.allclose(y4, jax.nn.softmax(x, axis=-1), atol=1e-6, rtol=1e-6)

    print("KERNEL_OK")
</pallas_src>

<mosaic_0001>
module attributes {stable_mosaic.version = 11 : i64} {
  func.func @_lambda_kernel(%arg0: i32, %arg1: memref<1x2048xf32, #tpu.memory_space<vmem>>, %arg2: memref<1x2048xf32, #tpu.memory_space<vmem>>) attributes {dimension_semantics = [#tpu.dimension_semantics<parallel>], iteration_bounds = array<i64: 1>, scalar_prefetch = 0 : i64, scratch_operands = 0 : i64, tpu.core_type = #tpu.core_type<tc>, window_params = [{transform_indices = @transform_0, window_bounds = array<i64: 1, 2048>}, {transform_indices = @transform_1, window_bounds = array<i64: 1, 2048>}]} {
    %c0 = arith.constant 0 : index
    %c0_0 = arith.constant 0 : index
    %0 = vector.load %arg1[%c0, %c0_0] : memref<1x2048xf32, #tpu.memory_space<vmem>>, vector<1x2048xf32>
    %cst = arith.constant 0.000000e+00 : f32
    %1 = vector.broadcast %cst : f32 to vector<1x2048xf32>
    %2 = arith.maximumf %0, %1 : vector<1x2048xf32>
    %cst_1 = arith.constant 1.500000e+00 : f32
    %3 = vector.broadcast %cst_1 : f32 to vector<1x2048xf32>
    %4 = arith.mulf %2, %3 : vector<1x2048xf32>
    %cst_2 = arith.constant 2.500000e-01 : f32
    %5 = vector.broadcast %cst_2 : f32 to vector<1x2048xf32>
    %6 = arith.addf %4, %5 : vector<1x2048xf32>
    %c0_3 = arith.constant 0 : index
    %c0_4 = arith.constant 0 : index
    %7 = vector.load %arg2[%c0_3, %c0_4] : memref<1x2048xf32, #tpu.memory_space<vmem>>, vector<1x2048xf32>
    tpu.vector_store %arg2[%c0_3, %c0_4], %6 {strides = array<i32>} : memref<1x2048xf32, #tpu.memory_space<vmem>>, vector<1x2048xf32>,
    return
  }
  func.func @transform_0(%arg0: i32) -> (i32, i32) {
    %c0_i32 = arith.constant 0 : i32
    %c0_i32_0 = arith.constant 0 : i32
    return %arg0, %c0_i32 : i32, i32
  }
  func.func @transform_1(%arg0: i32) -> (i32, i32) {
    %c0_i32 = arith.constant 0 : i32
    %c0_i32_0 = arith.constant 0 : i32
    return %arg0, %c0_i32 : i32, i32
  }
}

</mosaic_0001>

<bundles_post_ra>
// kernel: tpu_custom_call.1
= control target key start
LH: loop header
LB: loop body
LE: loop exit
PB: predicated region body
PF: predicated region fallthrough
CT: control target
= control target key end

     0   :  { %6 = vsyncpa [#allocation3], 0  ;;  %s132_s0 = inlined_call_operand.hbm [shape: f32[1,2048], index: 0, kind: input, shape index: {}]   ;;  %s133_s1 = inlined_call_operand.hbm [shape: f32[1,2048], index: 1, kind: output, shape index: {}]  }
   0x1   :  { %7 = vsyncpa [#allocation4], 0  ;;  %s96_s6 = smov [#allocation2]   ;;  %s48_s10 = scalar_lea.hbm %s132_s0, 256 }
   0x2   :  { %s14_s7 = sshll.u32 %s96_s6, 4  ;;  %p49_p0 = scmp.ne.s32.totalorder %s132_s0, %s48_s10  ;;  %s15_s7 = int_to_ptr.vmem [resolvable:$true] %s14_s7 }
   0x3   :  { %p52_p1 = scmp.lt.u32.totalorder %s48_s10, %s132_s0 }
   0x5   :  { %p54_p2 = pnand %p52_p1, %p49_p0 }
   0x7   :  { %57 = shalt.err (!%p54_p2)
}
   0x8   :  { %s58_s15 = scalar_lea.vmem %s15_s7, 256  ;;  %p63_p4 = scmp.lt.s32.totalorder %s15_s7, %s15_s7 }
   0x9   :  { %p59_p3 = scmp.ne.s32.totalorder %s15_s7, %s58_s15  ;;  %p64_p5 = scmp.lt.s32.totalorder %s58_s15, %s58_s15 }
   0xb   :  { %p65_p6 = por %p64_p5, %p63_p4 }
   0xd   :  { %p66_p7 = pnand %p65_p6, %p59_p3 }
   0xf   :  { %69 = shalt.err (!%p66_p7)
}
  0x10   :  { %17 = dma.hbm_to_vmem [thread:$0]  %s132_s0, 256, %s15_s7, [#allocation3]  }
  0x11   :  { %92 = dma.done.wait [#allocation3], 256  }
  0x12   :  { %93 = vsyncadd [#allocation3], 4294967040  ;;  %v21_v0 = vld [vmem:[#allocation2] sm:$0xff]  ;;  %v22_v1 = vld [vmem:[#allocation2 + $0x8] sm:$0xff]  ;;  %s97_s18 = smov [#allocation5]  }
  0x13   :  { %v23_v2 = vmax.f32 %v21_v0, 0.0  ;;  %v24_v3 = vmax.f32 %v22_v1, 0.0  ;;  %s37_s19 = sshll.u32 %s97_s18, 4  ;;  %s38_s19 = int_to_ptr.vmem [resolvable:$true] %s37_s19 }
  0x14   :  { %s70_s20 = scalar_lea.vmem %s38_s19, 256  ;;  %p75_p9 = scmp.lt.s32.totalorder %s38_s19, %s38_s19 }
  0x15   :  { %v25_v4 = vmul.f32 1.5, %v23_v2  ;;  %v26_v5 = vmul.f32 1.5, %v24_v3  ;;  %p71_p8 = scmp.ne.s32.totalorder %s38_s19, %s70_s20  ;;  %p76_p10 = scmp.lt.s32.totalorder %s70_s20, %s70_s20 }
  0x17   :  { %v27_v6 = vadd.f32 0.25, %v25_v4  ;;  %v28_v7 = vadd.f32 0.25, %v26_v5  ;;  %p77_p11 = por %p76_p10, %p75_p9 }
  0x19   :  { %29 = vst [vmem:[#allocation5] sm:$0xff] %v27_v6  ;;  %30 = vst [vmem:[#allocation5 + $0x8] sm:$0xff] %v28_v7  ;;  %p78_p12 = pnand %p77_p11, %p71_p8 }
  0x1b   :  { %81 = shalt.err (!%p78_p12)
}
  0x1c   :  { %s82_s22 = scalar_lea.hbm %s133_s1, 256 }
  0x1d   :  { %p83_p13 = scmp.ne.s32.totalorder %s133_s1, %s82_s22  ;;  %p86_p0 = scmp.lt.u32.totalorder %s82_s22, %s133_s1 }
  0x1f   :  { %p88_p1 = pnand %p86_p0, %p83_p13 }
  0x21   :  { %91 = shalt.err (!%p88_p1)
}
  0x22   :  { %40 = dma.vmem_to_hbm [thread:$0]  %s38_s19, 256, %s133_s1, [#allocation4]  }
  0x23   :  { %94 = dma.done.wait [#allocation4], 256  }
  0x24   :  { %95 = vsyncadd [#allocation4], 4294967040 }
  0x25   :  { %44 = vsyncpa [#allocation3], 1 }
  0x26   :  { %45 = vsyncpa [#allocation4], 1 }

</bundles_post_ra>
